<compile_context>
chip_gen: v7x
topology: tpu7x:2x2x1
jax: 0.10.0
libtpu: 0.0.40
codegen_flags: <defaults>
</compile_context>

<pallas_src>
import jax
import jax.numpy as jnp
from jax.experimental import pallas as pl
from jax.experimental.pallas import tpu as pltpu

N_INPUT, N_HIDDEN, N_OUTPUT = 1, 32, 1
# Hidden MXU layers actually consumed by the forward: linear2..linear5, linear7.
# (linear6 is computed-but-unused in the torch forward, so it is omitted.)
N_HIDDEN_LAYERS = 5


def mlp_kernel(x_ref, vecs_ref, w_hid_ref, b_hid_ref, o_ref):
    # Feature-major activations: h is (H, TB); batch along the 128-lane axis.
    x = x_ref[...]                       # (1, TB)
    w1 = vecs_ref[:, 0:1]                # (H, 1)  linear1 weight column
    b1 = vecs_ref[:, 1:2]                # (H, 1)  linear1 bias column
    w8 = vecs_ref[:, 2:3]                # (H, 1)  linear8 weight (transposed)
    b8 = vecs_ref[0:1, 3:4]              # (1, 1)  linear8 bias (scalar)

    # linear1: K=1 contraction -> pure VPU broadcast (outer-product) multiply.
    h = jnp.maximum(w1 * x + b1, 0.0)    # (H, TB)

    # linear2..linear5, linear7: (H,H) contractions on the MXU, y = W @ h + b.
    for l in range(N_HIDDEN_LAYERS):     # unrolled at trace time
        h = jnp.maximum(
            jnp.dot(w_hid_ref[l], h, preferred_element_type=jnp.float32)
            + b_hid_ref[l],
            0.0)                         # (H, TB)

    # linear8: M=1 contraction -> VPU multiply + XLU sublane reduction.
    o_ref[...] = jnp.sum(h * w8, axis=0, keepdims=True) + b8   # (1, TB)


def mlp_explicit_4(x, params, *, tb=128):
    """x: (B, N_INPUT) f32. Returns (B, N_OUTPUT) f32."""
    B = x.shape[0]
    assert x.shape == (B, N_INPUT)
    assert B % tb == 0, "batch must be a multiple of the batch tile"
    grid = (B // tb,)

    # (B, 1) -> (1, B): free layout plumbing (contiguous reshape) so the kernel
    # sees batch on the lane axis and the output store is lane-dense.
    x_t = x.reshape(1, B)

    out_t = pl.pallas_call(
        mlp_kernel,
        out_shape=jax.ShapeDtypeStruct((1, B), jnp.float32),
        grid_spec=pltpu.PrefetchScalarGridSpec(
            num_scalar_prefetch=0,
            grid=grid,
            in_specs=[
                # streamed per batch tile (lane-dense)
                pl.BlockSpec((1, tb), lambda i: (0, i)),
                # packed params: resident in VMEM across all grid steps
                pl.BlockSpec((N_HIDDEN, 4), lambda i: (0, 0)),
                pl.BlockSpec((N_HIDDEN_LAYERS, N_HIDDEN, N_HIDDEN),
                             lambda i: (0, 0, 0)),
                pl.BlockSpec((N_HIDDEN_LAYERS, N_HIDDEN, 1),
                             lambda i: (0, 0, 0)),
            ],
            out_specs=pl.BlockSpec((1, tb), lambda i: (0, i)),
        ),
        compiler_params=pltpu.CompilerParams(
            dimension_semantics=("parallel",)),
    )(x_t, params["vecs"], params["w_hid"], params["b_hid"])

    return out_t.reshape(B, N_OUTPUT)


def init_params(key):
    """PyTorch nn.Linear-style init (U(-k, k), k = 1/sqrt(fan_in)), stored in
    the packed / feature-major layout the kernel consumes."""
    H = N_HIDDEN
    keys = jax.random.split(key, 14)

    def u(k, shape, fan_in):
        bound = 1.0 / jnp.sqrt(jnp.float32(fan_in))
        return jax.random.uniform(k, shape, jnp.float32, -bound, bound)

    # linear1: torch weight (H, 1) used as-is (column), bias as column (H, 1).
    w1_col = u(keys[0], (H, 1), N_INPUT)
    b1_col = u(keys[1], (H, 1), N_INPUT)
    # linear2..linear5, linear7: torch weight (H, H) used UN-transposed
    # (feature-major layout computes y = W @ h + b_col); bias as (H, 1) column.
    w_hid = jnp.stack([u(keys[2 + 2 * l], (H, H), H)
                       for l in range(N_HIDDEN_LAYERS)])
    b_hid = jnp.stack([u(keys[3 + 2 * l], (H, 1), H)
                       for l in range(N_HIDDEN_LAYERS)])
    # linear8: torch weight (1, H) stored transposed as column (H, 1); scalar bias.
    w8_col = u(keys[12], (H, 1), H)
    b8 = u(keys[13], (1,), H)

    vecs = jnp.concatenate(
        [w1_col, b1_col, w8_col, jnp.full((H, 1), b8[0], jnp.float32)], axis=1)
    return {"vecs": vecs, "w_hid": w_hid, "b_hid": b_hid}


def mlp_reference(x, params):
    """Pure-JAX reference with identical forward semantics (batch-major)."""
    vecs = params["vecs"]
    w1 = vecs[:, 0:1]                      # (H, 1) = torch linear1 weight
    b1 = vecs[:, 1]                        # (H,)
    w8 = vecs[:, 2:3]                      # (H, 1) = torch linear8 weight.T
    b8 = vecs[0, 3]
    h = jnp.maximum(x @ w1.T + b1, 0.0)    # (B, H)
    for l in range(N_HIDDEN_LAYERS):
        h = jnp.maximum(h @ params["w_hid"][l].T + params["b_hid"][l][:, 0], 0.0)
    return h @ w8 + b8                     # (B, 1)


if __name__ == "__main__":
    key = jax.random.PRNGKey(0)
    key, kx = jax.random.split(key)
    params = init_params(key)

    B = 256  # two batch tiles of 128 -> exercises the grid + resident weights
    # inputs in [0, 1], like np.linspace(0, 1, ...) in the original script
    x = jax.random.uniform(kx, (B, N_INPUT), jnp.float32, 0.0, 1.0)

    out = jax.block_until_ready(mlp_explicit_4(x, params))
    ref = mlp_reference(x, params)

    assert out.shape == (B, N_OUTPUT)
    assert jnp.allclose(out, ref, atol=1e-5, rtol=1e-5)

    print("KERNEL_OK")
</pallas_src>

<mosaic_0001>
module attributes {stable_mosaic.version = 11 : i64} {
  func.func @mlp_kernel(%arg0: i32, %arg1: memref<1x128xf32, #tpu.memory_space<vmem>>, %arg2: memref<32x4xf32, #tpu.memory_space<vmem>>, %arg3: memref<5x32x32xf32, #tpu.memory_space<vmem>>, %arg4: memref<5x32x1xf32, #tpu.memory_space<vmem>>, %arg5: memref<1x128xf32, #tpu.memory_space<vmem>>) attributes {dimension_semantics = [#tpu.dimension_semantics<parallel>], iteration_bounds = array<i64: 2>, scalar_prefetch = 0 : i64, scratch_operands = 0 : i64, tpu.core_type = #tpu.core_type<tc>, window_params = [{transform_indices = @transform_0, window_bounds = array<i64: 1, 128>}, {pipeline_mode = #tpu.pipeline_mode<synchronous>, transform_indices = @transform_1, window_bounds = array<i64: 32, 4>}, {pipeline_mode = #tpu.pipeline_mode<synchronous>, transform_indices = @transform_2, window_bounds = array<i64: 5, 32, 32>}, {pipeline_mode = #tpu.pipeline_mode<synchronous>, transform_indices = @transform_3, window_bounds = array<i64: 5, 32, 1>}, {transform_indices = @transform_4, window_bounds = array<i64: 1, 128>}]} {
    %c0 = arith.constant 0 : index
    %c0_0 = arith.constant 0 : index
    %0 = vector.load %arg1[%c0, %c0_0] : memref<1x128xf32, #tpu.memory_space<vmem>>, vector<1x128xf32>
    %c0_1 = arith.constant 0 : index
    %c0_2 = arith.constant 0 : index
    %1 = vector.load %arg2[%c0_1, %c0_2] : memref<32x4xf32, #tpu.memory_space<vmem>>, vector<32x1xf32>
    %c0_3 = arith.constant 0 : index
    %c1 = arith.constant 1 : index
    %2 = vector.load %arg2[%c0_3, %c1] : memref<32x4xf32, #tpu.memory_space<vmem>>, vector<32x1xf32>
    %c0_4 = arith.constant 0 : index
    %c2 = arith.constant 2 : index
    %3 = vector.load %arg2[%c0_4, %c2] : memref<32x4xf32, #tpu.memory_space<vmem>>, vector<32x1xf32>
    %c0_5 = arith.constant 0 : index
    %c3 = arith.constant 3 : index
    %4 = vector.load %arg2[%c0_5, %c3] : memref<32x4xf32, #tpu.memory_space<vmem>>, vector<1x1xf32>
    %5 = vector.broadcast %1 : vector<32x1xf32> to vector<32x128xf32>
    %6 = vector.broadcast %0 : vector<1x128xf32> to vector<32x128xf32>
    %7 = arith.mulf %5, %6 : vector<32x128xf32>
    %8 = vector.broadcast %2 : vector<32x1xf32> to vector<32x128xf32>
    %9 = arith.addf %7, %8 : vector<32x128xf32>
    %cst = arith.constant 0.000000e+00 : f32
    %10 = vector.broadcast %cst : f32 to vector<32x128xf32>
    %11 = arith.maximumf %9, %10 : vector<32x128xf32>
    %c0_6 = arith.constant 0 : index
    %c0_7 = arith.constant 0 : index
    %c0_8 = arith.constant 0 : index
    %12 = vector.load %arg3[%c0_6, %c0_7, %c0_8] : memref<5x32x32xf32, #tpu.memory_space<vmem>>, vector<1x32x32xf32>
    %13 = vector.shape_cast %12 : vector<1x32x32xf32> to vector<32x32xf32>
    %cst_9 = arith.constant dense<0.000000e+00> : vector<32x128xf32>
    %14 = tpu.matmul %13, %11, %cst_9 {dimension_numbers = #tpu.dot_dimension_numbers<[1], [0], [0], [1], [0, 0, 1, 1], [], []>} : vector<32x32xf32>, vector<32x128xf32>, vector<32x128xf32> -> vector<32x128xf32>
    %c0_10 = arith.constant 0 : index
    %c0_11 = arith.constant 0 : index
    %c0_12 = arith.constant 0 : index
    %15 = vector.load %arg4[%c0_10, %c0_11, %c0_12] : memref<5x32x1xf32, #tpu.memory_space<vmem>>, vector<1x32x1xf32>
    %16 = vector.shape_cast %15 : vector<1x32x1xf32> to vector<32x1xf32>
    %17 = vector.broadcast %16 : vector<32x1xf32> to vector<32x128xf32>
    %18 = arith.addf %14, %17 : vector<32x128xf32>
    %cst_13 = arith.constant 0.000000e+00 : f32
    %19 = vector.broadcast %cst_13 : f32 to vector<32x128xf32>
    %20 = arith.maximumf %18, %19 : vector<32x128xf32>
    %c1_14 = arith.constant 1 : index
    %c0_15 = arith.constant 0 : index
    %c0_16 = arith.constant 0 : index
    %21 = vector.load %arg3[%c1_14, %c0_15, %c0_16] : memref<5x32x32xf32, #tpu.memory_space<vmem>>, vector<1x32x32xf32>
    %22 = vector.shape_cast %21 : vector<1x32x32xf32> to vector<32x32xf32>
    %cst_17 = arith.constant dense<0.000000e+00> : vector<32x128xf32>
    %23 = tpu.matmul %22, %20, %cst_17 {dimension_numbers = #tpu.dot_dimension_numbers<[1], [0], [0], [1], [0, 0, 1, 1], [], []>} : vector<32x32xf32>, vector<32x128xf32>, vector<32x128xf32> -> vector<32x128xf32>
    %c1_18 = arith.constant 1 : index
    %c0_19 = arith.constant 0 : index
    %c0_20 = arith.constant 0 : index
    %24 = vector.load %arg4[%c1_18, %c0_19, %c0_20] : memref<5x32x1xf32, #tpu.memory_space<vmem>>, vector<1x32x1xf32>
    %25 = vector.shape_cast %24 : vector<1x32x1xf32> to vector<32x1xf32>
    %26 = vector.broadcast %25 : vector<32x1xf32> to vector<32x128xf32>
    %27 = arith.addf %23, %26 : vector<32x128xf32>
    %cst_21 = arith.constant 0.000000e+00 : f32
    %28 = vector.broadcast %cst_21 : f32 to vector<32x128xf32>
    %29 = arith.maximumf %27, %28 : vector<32x128xf32>
    %c2_22 = arith.constant 2 : index
    %c0_23 = arith.constant 0 : index
    %c0_24 = arith.constant 0 : index
    %30 = vector.load %arg3[%c2_22, %c0_23, %c0_24] : memref<5x32x32xf32, #tpu.memory_space<vmem>>, vector<1x32x32xf32>
    %31 = vector.shape_cast %30 : vector<1x32x32xf32> to vector<32x32xf32>
    %cst_25 = arith.constant dense<0.000000e+00> : vector<32x128xf32>
    %32 = tpu.matmul %31, %29, %cst_25 {dimension_numbers = #tpu.dot_dimension_numbers<[1], [0], [0], [1], [0, 0, 1, 1], [], []>} : vector<32x32xf32>, vector<32x128xf32>, vector<32x128xf32> -> vector<32x128xf32>
    %c2_26 = arith.constant 2 : index
    %c0_27 = arith.constant 0 : index
    %c0_28 = arith.constant 0 : index
    %33 = vector.load %arg4[%c2_26, %c0_27, %c0_28] : memref<5x32x1xf32, #tpu.memory_space<vmem>>, vector<1x32x1xf32>
    %34 = vector.shape_cast %33 : vector<1x32x1xf32> to vector<32x1xf32>
    %35 = vector.broadcast %34 : vector<32x1xf32> to vector<32x128xf32>
    %36 = arith.addf %32, %35 : vector<32x128xf32>
    %cst_29 = arith.constant 0.000000e+00 : f32
    %37 = vector.broadcast %cst_29 : f32 to vector<32x128xf32>
    %38 = arith.maximumf %36, %37 : vector<32x128xf32>
    %c3_30 = arith.constant 3 : index
    %c0_31 = arith.constant 0 : index
    %c0_32 = arith.constant 0 : index
    %39 = vector.load %arg3[%c3_30, %c0_31, %c0_32] : memref<5x32x32xf32, #tpu.memory_space<vmem>>, vector<1x32x32xf32>
    %40 = vector.shape_cast %39 : vector<1x32x32xf32> to vector<32x32xf32>
    %cst_33 = arith.constant dense<0.000000e+00> : vector<32x128xf32>
    %41 = tpu.matmul %40, %38, %cst_33 {dimension_numbers = #tpu.dot_dimension_numbers<[1], [0], [0], [1], [0, 0, 1, 1], [], []>} : vector<32x32xf32>, vector<32x128xf32>, vector<32x128xf32> -> vector<32x128xf32>
    %c3_34 = arith.constant 3 : index
    %c0_35 = arith.constant 0 : index
    %c0_36 = arith.constant 0 : index
    %42 = vector.load %arg4[%c3_34, %c0_35, %c0_36] : memref<5x32x1xf32, #tpu.memory_space<vmem>>, vector<1x32x1xf32>
    %43 = vector.shape_cast %42 : vector<1x32x1xf32> to vector<32x1xf32>
    %44 = vector.broadcast %43 : vector<32x1xf32> to vector<32x128xf32>
    %45 = arith.addf %41, %44 : vector<32x128xf32>
    %cst_37 = arith.constant 0.000000e+00 : f32
    %46 = vector.broadcast %cst_37 : f32 to vector<32x128xf32>
    %47 = arith.maximumf %45, %46 : vector<32x128xf32>
    %c4 = arith.constant 4 : index
    %c0_38 = arith.constant 0 : index
    %c0_39 = arith.constant 0 : index
    %48 = vector.load %arg3[%c4, %c0_38, %c0_39] : memref<5x32x32xf32, #tpu.memory_space<vmem>>, vector<1x32x32xf32>
    %49 = vector.shape_cast %48 : vector<1x32x32xf32> to vector<32x32xf32>
    %cst_40 = arith.constant dense<0.000000e+00> : vector<32x128xf32>
    %50 = tpu.matmul %49, %47, %cst_40 {dimension_numbers = #tpu.dot_dimension_numbers<[1], [0], [0], [1], [0, 0, 1, 1], [], []>} : vector<32x32xf32>, vector<32x128xf32>, vector<32x128xf32> -> vector<32x128xf32>
    %c4_41 = arith.constant 4 : index
    %c0_42 = arith.constant 0 : index
    %c0_43 = arith.constant 0 : index
    %51 = vector.load %arg4[%c4_41, %c0_42, %c0_43] : memref<5x32x1xf32, #tpu.memory_space<vmem>>, vector<1x32x1xf32>
    %52 = vector.shape_cast %51 : vector<1x32x1xf32> to vector<32x1xf32>
    %53 = vector.broadcast %52 : vector<32x1xf32> to vector<32x128xf32>
    %54 = arith.addf %50, %53 : vector<32x128xf32>
    %cst_44 = arith.constant 0.000000e+00 : f32
    %55 = vector.broadcast %cst_44 : f32 to vector<32x128xf32>
    %56 = arith.maximumf %54, %55 : vector<32x128xf32>
    %57 = vector.broadcast %3 : vector<32x1xf32> to vector<32x128xf32>
    %58 = arith.mulf %56, %57 : vector<32x128xf32>
    %cst_45 = arith.constant dense<0.000000e+00> : vector<128xf32>
    %59 = vector.multi_reduction <add>, %58, %cst_45 [0] : vector<32x128xf32> to vector<128xf32>
    %60 = vector.shape_cast %59 : vector<128xf32> to vector<1x128xf32>
    %61 = vector.broadcast %4 : vector<1x1xf32> to vector<1x128xf32>
    %62 = arith.addf %60, %61 : vector<1x128xf32>
    %c0_46 = arith.constant 0 : index
    %c0_47 = arith.constant 0 : index
    %63 = vector.load %arg5[%c0_46, %c0_47] : memref<1x128xf32, #tpu.memory_space<vmem>>, vector<1x128xf32>
    tpu.vector_store %arg5[%c0_46, %c0_47], %62 {strides = array<i32>} : memref<1x128xf32, #tpu.memory_space<vmem>>, vector<1x128xf32>,
    return
  }
  func.func @transform_0(%arg0: i32) -> (i32, i32) {
    %c0_i32 = arith.constant 0 : i32
    %c0_i32_0 = arith.constant 0 : i32
    return %c0_i32, %arg0 : i32, i32
  }
  func.func @transform_1(%arg0: i32) -> (i32, i32) {
    %c0_i32 = arith.constant 0 : i32
    %c0_i32_0 = arith.constant 0 : i32
    %c0_i32_1 = arith.constant 0 : i32
    return %c0_i32, %c0_i32_0 : i32, i32
  }
  func.func @transform_2(%arg0: i32) -> (i32, i32, i32) {
    %c0_i32 = arith.constant 0 : i32
    %c0_i32_0 = arith.constant 0 : i32
    %c0_i32_1 = arith.constant 0 : i32
    %c0_i32_2 = arith.constant 0 : i32
    return %c0_i32, %c0_i32_0, %c0_i32_1 : i32, i32, i32
  }
  func.func @transform_3(%arg0: i32) -> (i32, i32, i32) {
    %c0_i32 = arith.constant 0 : i32
    %c0_i32_0 = arith.constant 0 : i32
    %c0_i32_1 = arith.constant 0 : i32
    %c0_i32_2 = arith.constant 0 : i32
    return %c0_i32, %c0_i32_0, %c0_i32_1 : i32, i32, i32
  }
  func.func @transform_4(%arg0: i32) -> (i32, i32) {
    %c0_i32 = arith.constant 0 : i32
    %c0_i32_0 = arith.constant 0 : i32
    return %c0_i32, %arg0 : i32, i32
  }
}

</mosaic_0001>

<bundles_post_ra>
// kernel: tpu_custom_call.1
= control target key start
LH: loop header
LB: loop body
LE: loop exit
PB: predicated region body
PF: predicated region fallthrough
CT: control target
= control target key end

     0   :  { %9 = vsyncpa [#allocation3], 0  ;;  %s1641_s0 = inlined_call_operand.vmem [shape: f32[1,256], index: 0, kind: input, shape index: {}]   ;;  %s1642_s1 = inlined_call_operand.vmem [shape: f32[32,4], index: 1, kind: input, shape index: {}]   ;;  %s1643_s2 = inlined_call_operand.vmem [shape: f32[5,32,32], index: 2, kind: input, shape index: {}]   ;;  %s1644_s3 = inlined_call_operand.vmem [shape: f32[5,32,1], index: 3, kind: input, shape index: {}]   ;;  %s1645_s4 = inlined_call_operand.hbm [shape: f32[1,256], index: 4, kind: output, shape index: {}]  }
   0x1   :  { %11 = vsyncpa [#allocation3 + $0x1], 0  ;;  %s1366_s15 = smov 0   ;;  %s1368_s16 = smov 0  }
   0x2   :  { %s1370_s17 = smov 0   ;;  %s1372_s18 = smov 0  }
   0x3 LB: > { %s1387_s19 = sadd.s32 4294967295, %s1334_s18   ;;  %s1004_s20 = sadd.s32 4294967294, %s1334_s18   ;;  %s1334_s18 = sphi %s1372_s18, %s1651_s18   ;;  %s1330_s17 = sphi %s1370_s17, %s1650_s17   ;;  %s1326_s16 = sphi %s1368_s16, %s1649_s16   ;;  %s1322_s15 = sphi %s1366_s15, %s1648_s15  }
   0x4   : > { %s1391_s21 = sadd.s32 1, %s1334_s18   ;;  %s113_s22 = sadd.s32 1, %s1330_s17 }
   0x5   : > { %s110_s23 = ssub.s32 %s1334_s18, %s1391_s21  ;;  %p123_p0 = scmp.ne.s32.totalorder %s1330_s17, %s1326_s16 }
   0x6   : > { %p111_p1 = scmp.eq.s32.totalorder %s110_s23, 0  ;;  %p124_p2 = scmp.eq.s32.totalorder %s1387_s19, 1 }
   0x7   : > { %p129_p3 = scmp.ne.s32.totalorder %s1326_s16, %s1322_s15  ;;  %p130_p4 = scmp.eq.s32.totalorder %s1004_s20, 1 }
   0x8   : > { %s1402_s24 = scalar_select %p111_p1, %s1330_s17, %s113_s22  }
   0x9   : > { %p1404_p5 = por %p124_p2, %p123_p0  ;;  %p1408_p6 = por %p130_p4, %p129_p3 }
   0xa   : > { %p1007_p7 = scmp.ge.s32.totalorder %s1334_s18, 1  ;;  %p163_p8 = scmp.lt.s32.totalorder %s1334_s18, 3 }
   0xc   : > { %p164_p9 = pnand %p1007_p7, %p163_p8 }
   0xd   : > { %v1417_v0 = vld [vmem:[%s1642_s1] sm:$0xff] (!%p164_p9)  ;;  %v1336_v1 = vmov (!%p164_p9), 1   ;;  %v1337_v2 = vmov (!%p164_p9), 0   ;;  %v1424_v3 = vld [vmem:[%s1642_s1 + $0x8] sm:$0xff] (!%p164_p9)  ;;  %v1431_v4 = vld [vmem:[%s1642_s1 + $0x10] sm:$0xff] (!%p164_p9)  ;;  %vm277_vm0 = vcmask (!%p164_p9), 261120  }
   0xe   : > { %167 = sbr.rel (%p164_p9) target bundleno = 1328 (0x530), region = 36  ;;  %1262 = vset.pattern.permute.xlu1 (!%p164_p9), %v1336_v1  ;;  %1261 = vset.pattern.permute.xlu0 (!%p164_p9), %v1337_v2  ;;  %v1436_v5 = vld [vmem:[%s1642_s1 + $0x18] sm:$0xff] (!%p164_p9)  ;;  %v249_v6 = vld [vmem:[%s1643_s2] sm:$0xff] (!%p164_p9)  ;;  %v254_v8 = vld [vmem:[%s1644_s3 + $0x8] sm:$0xff] (!%p164_p9)  ;;  %p186_p10 = scmp.lt.s32.totalorder (!%p164_p9), %s1387_s19, 1 }
   0xf   : > { %226 = vperm.xlu1 (!%p164_p9), %1262, %v1417_v0   ;;  %197 = vperm.xlu0 (!%p164_p9), %1261, %v1417_v0   ;;  %v253_v7 = vld [vmem:[%s1644_s3] sm:$0xff] (!%p164_p9)  ;;  %v255_v9 = vld [vmem:[%s1644_s3 + $0x10] sm:$0xff] (!%p164_p9)  ;;  %v256_v11 = vld [vmem:[%s1644_s3 + $0x18] sm:$0xff] (!%p164_p9)  ;;  %s184_s10 = sand.u32 (!%p164_p9), 1, %s1326_s16   ;;  %s1061_s11 = sshll.u32 (!%p164_p9), %s1387_s19, 4 }
  0x10   : > { %1112 = vmatprep.mubr.msk.f32.mxu0 (!%p164_p9), %vm277_vm0, %v249_v6  ;;  %v1017_v10 = vld [vmem:[%s1644_s3 + $0x20] sm:$0xff] (!%p164_p9)  ;;  %v1019_v12 = vld [vmem:[%s1644_s3 + $0x30] sm:$0xff] (!%p164_p9)  ;;  %v1018_v13 = vld [vmem:[%s1644_s3 + $0x28] sm:$0xff] (!%p164_p9)  ;;  %s185_s12 = scalar_lea.vmem (!%p164_p9), [#allocation2], %s184_s10  ;;  %s1599_s22 = scalar_lea.hbm (!%p164_p9), %s1645_s4, %s1061_s11 }
  0x11   : > { %v1029_v14 = vld [vmem:[%s1644_s3 + $0x40] sm:$0xff] (!%p164_p9)  ;;  %v1020_v15 = vld [vmem:[%s1644_s3 + $0x38] sm:$0xff] (!%p164_p9)  ;;  %v1031_v16 = vld [vmem:[%s1644_s3 + $0x50] sm:$0xff] (!%p164_p9)  ;;  %s952_s13 = sshll.u32 (!%p164_p9), %s185_s12, 4  ;;  %s1601_s13 = int_to_ptr.vmem [resolvable:$true] %s952_s13 }
  0x12   : > { %v1030_v17 = vld [vmem:[%s1644_s3 + $0x48] sm:$0xff] (!%p164_p9)  ;;  %v1041_v18 = vld [vmem:[%s1644_s3 + $0x60] sm:$0xff] (!%p164_p9)  ;;  %v1032_v19 = vld [vmem:[%s1644_s3 + $0x58] sm:$0xff] (!%p164_p9)  ;;  %s1272_s27 = scalar_lea.vmem (!%p164_p9), %s1601_s13, 16 }
  0x13   : > { %230 = vperm.xlu1 (!%p164_p9), %1262, %v1424_v3   ;;  %202 = vperm.xlu0 (!%p164_p9), %1261, %v1424_v3   ;;  %v1043_v20 = vld [vmem:[%s1644_s3 + $0x70] sm:$0xff] (!%p164_p9)  ;;  %v1042_v21 = vld [vmem:[%s1644_s3 + $0x68] sm:$0xff] (!%p164_p9)  ;;  %v1053_v22 = vld [vmem:[%s1644_s3 + $0x80] sm:$0xff] (!%p164_p9)  ;;  %p1273_p11 = scmp.ne.s32.totalorder (!%p164_p9), %s1601_s13, %s1272_s27 }
  0x14   : > { %v1044_v23 = vld [vmem:[%s1644_s3 + $0x78] sm:$0xff] (!%p164_p9)  ;;  %v1055_v24 = vld [vmem:[%s1644_s3 + $0x90] sm:$0xff] (!%p164_p9)  ;;  %v1054_v25 = vld [vmem:[%s1644_s3 + $0x88] sm:$0xff] (!%p164_p9) }
  0x15   : > { %v1056_v26 = vld [vmem:[%s1644_s3 + $0x98] sm:$0xff]  ;;  %s187_s23 = scalar_select %p186_p10, %s1387_s19, 1  ;;  %v250_v50 = vld [vmem:[%s1643_s2 + $0x8] sm:$0xff]  ;;  %v251_v51 = vld [vmem:[%s1643_s2 + $0x10] sm:$0xff] }
  0x16   : > { %v252_v52 = vld [vmem:[%s1643_s2 + $0x18] sm:$0xff]  ;;  %v1013_v53 = vld [vmem:[%s1643_s2 + $0x20] sm:$0xff]  ;;  %p1274_p12 = pnand %p1273_p11, %p1404_p5  ;;  %s1340_s19 = smov [#allocation2]  }
  0x17   : > { %1263 = vset.pattern.permute.xlu1 %v1337_v2  ;;  %207 = vperm.xlu0 %1261, %v1431_v4   ;;  %s188_s29 = scalar_lea.vmem %s1641_s0, %s187_s23  ;;  %s940_s23 = scalar_lea.sflag [#allocation3], %s184_s10 }
  0x18   : > { %212 = vperm.xlu1 %1263, %v1436_v5   ;;  %v1008_v27 = vld [vmem:[%s188_s29] ss:$0 sm:$0xff]  ;;  %1126 = vmatprep.mubr.msk.f32.mxu1 %vm277_vm0, %v1013_v53  ;;  %p1275_p13 = pneg %p1274_p12  ;;  %s1276_s28 = sshll.u32 %s1340_s19, 4  ;;  %s1277_s28 = int_to_ptr.vmem [resolvable:$false] %s1276_s28 }
  0x19   : > { %s1278_s29 = scalar_lea.vmem %s1277_s28, 32  ;;  %p1279_p0 = scmp.lt.s32.totalorder %s1601_s13, %s1277_s28 }
  0x1a   : > { %p1280_p1 = scmp.lt.s32.totalorder %s1278_s29, %s1272_s27 }
  0x1b   : > { %1264 = vset.pattern.permute.xlu0 %v1336_v1 }
  0x1c   : > { %1265 = vset.pattern.permute.xlu1 %v1336_v1  ;;  %234 = vperm.xlu0 %1264, %v1431_v4   ;;  %p1281_p2 = por %p1280_p1, %p1279_p0 }
  0x1d   : > { %238 = vperm.xlu1 %1265, %v1436_v5  }
  0x1e   : > { %p1282_p3 = pnand %p1281_p2, %p1275_p13 }
  0x20   : > { %1267 = vset.pattern.permute.xlu0 %v1337_v2 }
  0x21   : > { %1266 = vset.pattern.permute.xlu1 %v1337_v2  ;;  %264 = vperm.xlu0 %1267, %v254_v8  }
  0x22   : > { %259 = vperm.xlu1 %1266, %v253_v7  }
  0x25   : > { %391 = vperm.xlu0 %1267, %v1017_v10  }
  0x26   : > { %269 = vperm.xlu1 %1266, %v255_v9  }
  0x29   : > { %401 = vperm.xlu0 %1267, %v1019_v12   ;;  %v1014_v12 = vld [vmem:[%s1643_s2 + $0x28] sm:$0xff] }
  0x2a   : > { %274 = vperm.xlu1 %1266, %v256_v11  }
  0x2d   : > { %522 = vperm.xlu0 %1267, %v1029_v14   ;;  %v1016_v14 = vld [vmem:[%s1643_s2 + $0x38] sm:$0xff] }
  0x2e   : > { %396 = vperm.xlu1 %1266, %v1018_v13   ;;  %v1015_v13 = vld [vmem:[%s1643_s2 + $0x30] sm:$0xff] }
  0x31   : > { %532 = vperm.xlu0 %1267, %v1031_v16  }
  0x32   : > { %406 = vperm.xlu1 %1266, %v1020_v15   ;;  %v1025_v15 = vld [vmem:[%s1643_s2 + $0x40] sm:$0xff] }
  0x35   : > { %653 = vperm.xlu0 %1267, %v1041_v18  }
  0x36   : > { %527 = vperm.xlu1 %1266, %v1030_v17  }
  0x39   : > { %663 = vperm.xlu0 %1267, %v1043_v20  }
  0x3a   : > { %537 = vperm.xlu1 %1266, %v1032_v19  }
  0x3d   : > { %784 = vperm.xlu0 %1267, %v1053_v22  }
  0x3e   : > { %658 = vperm.xlu1 %1266, %v1042_v21  }
  0x41   : > { %794 = vperm.xlu0 %1267, %v1055_v24  }
  0x42   : > { %668 = vperm.xlu1 %1266, %v1044_v23  }
  0x46   : > { %789 = vperm.xlu1 %1266, %v1054_v25  }
  0x4a   : > { %799 = vperm.xlu1 %1266, %v1056_v26  }
  0x8e   : > { %v227_v28 = vpop.permute.xlu1 %226  ;;  %v198_v29 = vpop.permute.xlu0 %197 }
  0x8f   : > { %v221_v30 = vmul.f32 %v1008_v27, %v198_v29 }
  0x91   : > { %v241_v33 = vadd.f32 %v227_v28, %v221_v30 }
  0x92   : > { %v231_v31 = vpop.permute.xlu1 %230  ;;  %v203_v32 = vpop.permute.xlu0 %202 }
  0x93   : > { %v222_v34 = vmul.f32 %v1008_v27, %v203_v32  ;;  %v245_v37 = vmax.f32 %v241_v33, 0.0 }
  0x95   : > { %v242_v35 = vadd.f32 %v231_v31, %v222_v34  ;;  %v1026_v34 = vld [vmem:[%s1643_s2 + $0x48] sm:$0xff] }
  0x96   : > { %v208_v36 = vpop.permute.xlu0 %207 }
  0x97   : > { %v246_v38 = vmax.f32 %v242_v35, 0.0  ;;  %v213_v39 = vpop.permute.xlu1 %212  ;;  %v223_v41 = vmul.f32 %v1008_v27, %v208_v36  ;;  %v1027_v35 = vld [vmem:[%s1643_s2 + $0x50] sm:$0xff]  ;;  %v1028_v36 = vld [vmem:[%s1643_s2 + $0x58] sm:$0xff] }
  0x98   : > { %v224_v42 = vmul.f32 %v1008_v27, %v213_v39 }
  0x99   : > { %v1174_v40 = vpack.c.bf16 %v246_v38, %v245_v37  ;;  %v1037_v37 = vld [vmem:[%s1643_s2 + $0x60] sm:$0xff] }
  0x9b   : > { %v235_v43 = vpop.permute.xlu0 %234  ;;  %1175 = vmatprep.subr.bf16.mxu0 %v1174_v40 }
  0x9c   : > { %v243_v44 = vadd.f32 %v235_v43, %v223_v41  ;;  %v239_v45 = vpop.permute.xlu1 %238  ;;  %1177 = vmatpush3.bf16.msra.mxu0 %v1174_v40 }
  0x9d   : > { %v244_v46 = vadd.f32 %v239_v45, %v224_v42 }
  0x9e   : > { %v247_v47 = vmax.f32 %v243_v44, 0.0 }
  0x9f   : > { %v248_v48 = vmax.f32 %v244_v46, 0.0 }
  0xa0   : > { %v265_v56 = vpop.permute.xlu0 %264 }
  0xa1   : > { %v1178_v49 = vpack.c.bf16 %v248_v48, %v247_v47  ;;  %v260_v54 = vpop.permute.xlu1 %259 }
  0xa3   : > { %1179 = vmatprep.subr.bf16.mxu0 %v1178_v49 }
  0xa4   : > { %1181 = vmatpush3.bf16.msra.mxu0 %v1178_v49  ;;  %v392_v17 = vpop.permute.xlu0 %391 }
  0xa5   : > { %v270_v55 = vpop.permute.xlu1 %269 }
  0xa7   : > { %1113 = vmatmul.mubr.msk.f32.vlgmr.msra.gmra.mrb[0].mxu0 %vm277_vm0, %v250_v50 }
  0xa8   : > { %1115 = vmatprep.mubr.msk.f32.mxu0 %vm277_vm0, %v251_v51  ;;  %v402_v26 = vpop.permute.xlu0 %401 }
  0xa9   : > { %v275_v62 = vpop.permute.xlu1 %274 }
  0xab   : > { %1116 = vmatmul.mubr.msk.f32.gmra.mrb[2].mxu0 %vm277_vm0, %v252_v52 }
  0xac   : > { %1140 = vmatprep.mubr.msk.f32.mxu0 %vm277_vm0, %v1025_v15  ;;  %v523_v39 = vpop.permute.xlu0 %522 }
  0xad   : > { %v397_v16 = vpop.permute.xlu1 %396 }
  0xb0   : > { %v533_v48 = vpop.permute.xlu0 %532 }
  0xb1   : > { %v407_v23 = vpop.permute.xlu1 %406 }
  0xb5   : > { %v528_v38 = vpop.permute.xlu1 %527 }
  0xb9   : > { %v538_v45 = vpop.permute.xlu1 %537 }
 0x17a   : > { %v1114_v57 = vpop.f32.mrb[0].mxu0 }
 0x17b   : > { %v362_v58 = vadd.f32 %v1114_v57, %v265_v56  ;;  %v356_v59 = vpop.f32.mrb[1].mxu0  ;;  %v1038_v56 = vld [vmem:[%s1643_s2 + $0x68] sm:$0xff]  ;;  %v1039_v57 = vld [vmem:[%s1643_s2 + $0x70] sm:$0xff] }
 0x17c   : > { %v357_v60 = vadd.f32 %v356_v59, %v260_v54  ;;  %v1049_v59 = vld [vmem:[%s1643_s2 + $0x80] sm:$0xff] }
 0x17d   : > { %v376_v61 = vmax.f32 %v362_v58, 0.0  ;;  %v1040_v58 = vld [vmem:[%s1643_s2 + $0x78] sm:$0xff] }
 0x17e   : > { %v375_v63 = vmax.f32 %v357_v60, 0.0  ;;  %v1117_v1 = vpop.f32.mrb[2].mxu0  ;;  %v1051_v60 = vld [vmem:[%s1643_s2 + $0x90] sm:$0xff] }
 0x17f   : > { %v372_v2 = vadd.f32 %v1117_v1, %v275_v62  ;;  %v366_v6 = vpop.f32.mrb[3].mxu0  ;;  %v194_v62 = vld [vmem:[%s1642_s1] sm:$0x1]  ;;  %v659_v1 = vpop.permute.xlu1 %658 }
 0x180   : > { %v367_v7 = vadd.f32 %v366_v6, %v270_v55  ;;  %v1182_v8 = vpack.c.bf16 %v376_v61, %v375_v63  ;;  %v1338_v61 = vmov 2   ;;  %v1339_v63 = vmov 3  }
 0x181   : > { %v378_v9 = vmax.f32 %v372_v2, 0.0  ;;  %1269 = vset.pattern.permute.xlu1 %v1338_v61  ;;  %1268 = vset.pattern.permute.xlu0 %v1338_v61  ;;  %v654_v2 = vpop.permute.xlu0 %653 }
 0x182   : > { %v377_v10 = vmax.f32 %v367_v7, 0.0  ;;  %1183 = vmatprep.subr.bf16.mxu1 %v1182_v8  ;;  %908 = vperm.xlu1 %1269, %v1424_v3  }
 0x183   : > { %1185 = vmatpush3.bf16.msra.mxu1 %v1182_v8  ;;  %904 = vperm.xlu0 %1268, %v1417_v0   ;;  %v669_v0 = vpop.permute.xlu1 %668 }
 0x184   : > { %v1186_v11 = vpack.c.bf16 %v378_v9, %v377_v10 }
 0x186   : > { %1187 = vmatprep.subr.bf16.mxu1 %v1186_v11  ;;  %912 = vperm.xlu1 %1269, %v1431_v4  }
 0x187   : > { %1189 = vmatpush3.bf16.msra.mxu1 %v1186_v11  ;;  %916 = vperm.xlu0 %1268, %v1436_v5   ;;  %v664_v11 = vpop.permute.xlu0 %663 }
 0x18a   : > { %1127 = vmatmul.mubr.msk.f32.vlgmr.msra.gmra.mrb[0].mxu1 %vm277_vm0, %v1014_v12  ;;  %1270 = vset.pattern.permute.xlu1 %v1339_v63 }
 0x18b   : > { %1129 = vmatprep.mubr.msk.f32.mxu1 %vm277_vm0, %v1015_v13  ;;  %1271 = vset.pattern.permute.xlu0 %v1339_v63 }
 0x18c   : > { %934 = vperm.xlu1 %1270, %v194_v62  }
 0x18e   : > { %1130 = vmatmul.mubr.msk.f32.gmra.mrb[2].mxu1 %vm277_vm0, %v1016_v14 }
 0x18f   : > { %1154 = vmatprep.mubr.msk.f32.mxu1 %vm277_vm0, %v1037_v37 }
 0x25d   : > { %v1128_v18 = vpop.f32.mrb[0].mxu1 }
 0x25e   : > { %v493_v19 = vadd.f32 %v1128_v18, %v397_v16  ;;  %v487_v20 = vpop.f32.mrb[1].mxu1  ;;  %v1050_v18 = vld [vmem:[%s1643_s2 + $0x88] sm:$0xff] }
 0x25f   : > { %v488_v21 = vadd.f32 %v487_v20, %v392_v17  ;;  %v790_v20 = vpop.permute.xlu1 %789 }
 0x260   : > { %v507_v22 = vmax.f32 %v493_v19, 0.0  ;;  %v1052_v19 = vld [vmem:[%s1643_s2 + $0x98] sm:$0xff] }
 0x261   : > { %v506_v24 = vmax.f32 %v488_v21, 0.0  ;;  %v1131_v25 = vpop.f32.mrb[2].mxu1  ;;  %v785_v21 = vpop.permute.xlu0 %784 }
 0x262   : > { %v503_v27 = vadd.f32 %v1131_v25, %v407_v23  ;;  %v497_v28 = vpop.f32.mrb[3].mxu1 }
 0x263   : > { %v1190_v29 = vpack.c.bf16 %v507_v22, %v506_v24  ;;  %v498_v30 = vadd.f32 %v497_v28, %v402_v26  ;;  %v800_v22 = vpop.permute.xlu1 %799 }
 0x264   : > { %v509_v31 = vmax.f32 %v503_v27, 0.0 }
 0x265   : > { %v508_v32 = vmax.f32 %v498_v30, 0.0  ;;  %1191 = vmatprep.subr.bf16.mxu0 %v1190_v29  ;;  %v795_v23 = vpop.permute.xlu0 %794 }
 0x266   : > { %1193 = vmatpush3.bf16.msra.mxu0 %v1190_v29 }
 0x267   : > { %v1194_v33 = vpack.c.bf16 %v509_v31, %v508_v32  ;;  %v909_v24 = vpop.permute.xlu1 %908 }
 0x269   : > { %1195 = vmatprep.subr.bf16.mxu0 %v1194_v33  ;;  %v905_v25 = vpop.permute.xlu0 %904 }
 0x26a   : > { %1197 = vmatpush3.bf16.msra.mxu0 %v1194_v33 }
 0x26d   : > { %1141 = vmatmul.mubr.msk.f32.vlgmr.msra.gmra.mrb[4].mxu0 %vm277_vm0, %v1026_v34 }
 0x26e   : > { %1143 = vmatprep.mubr.msk.f32.mxu0 %vm277_vm0, %v1027_v35 }
 0x271   : > { %1144 = vmatmul.mubr.msk.f32.gmra.mrb[6].mxu0 %vm277_vm0, %v1028_v36 }
 0x272   : > { %1168 = vmatprep.mubr.msk.f32.mxu0 %vm277_vm0, %v1049_v59 }
 0x340   : > { %v1142_v40 = vpop.f32.mrb[4].mxu0 }
 0x341   : > { %v624_v41 = vadd.f32 %v1142_v40, %v528_v38  ;;  %v618_v42 = vpop.f32.mrb[5].mxu0  ;;  %v913_v40 = vpop.permute.xlu1 %912 }
 0x342   : > { %v619_v43 = vadd.f32 %v618_v42, %v523_v39 }
 0x343   : > { %v638_v44 = vmax.f32 %v624_v41, 0.0  ;;  %v917_v41 = vpop.permute.xlu0 %916 }
 0x344   : > { %v637_v46 = vmax.f32 %v619_v43, 0.0  ;;  %v1145_v47 = vpop.f32.mrb[6].mxu0 }
 0x345   : > { %v634_v49 = vadd.f32 %v1145_v47, %v538_v45  ;;  %v628_v50 = vpop.f32.mrb[7].mxu0 }
 0x346   : > { %v1198_v51 = vpack.c.bf16 %v638_v44, %v637_v46  ;;  %v629_v52 = vadd.f32 %v628_v50, %v533_v48 }
 0x347   : > { %v640_v53 = vmax.f32 %v634_v49, 0.0 }
 0x348   : > { %v639_v54 = vmax.f32 %v629_v52, 0.0  ;;  %1199 = vmatprep.subr.bf16.mxu1 %v1198_v51  ;;  %v935_v52 = vpop.permute.xlu1 %934 }
 0x349   : > { %1201 = vmatpush3.bf16.msra.mxu1 %v1198_v51 }
 0x34a   : > { %v1202_v55 = vpack.c.bf16 %v640_v53, %v639_v54 }
 0x34c   : > { %1203 = vmatprep.subr.bf16.mxu1 %v1202_v55 }
 0x34d   : > { %1205 = vmatpush3.bf16.msra.mxu1 %v1202_v55 }
 0x350   : > { %1155 = vmatmul.mubr.msk.f32.vlgmr.msra.gmra.mrb[4].mxu1 %vm277_vm0, %v1038_v56 }
 0x351   : > { %1157 = vmatprep.mubr.msk.f32.mxu1 %vm277_vm0, %v1039_v57 }
 0x354   : > { %1158 = vmatmul.mubr.msk.f32.gmra.mrb[6].mxu1 %vm277_vm0, %v1040_v58 }
 0x355   : > { %1171 = vmatprep.mubr.msk.f32.mxu1 %vm277_vm0, %v1051_v60 }
 0x423   : > { %v1156_v6 = vpop.f32.mrb[4].mxu1 }
 0x424   : > { %v755_v7 = vadd.f32 %v1156_v6, %v659_v1  ;;  %v749_v8 = vpop.f32.mrb[5].mxu1 }
 0x425   : > { %v750_v3 = vadd.f32 %v749_v8, %v654_v2 }
 0x426   : > { %v769_v9 = vmax.f32 %v755_v7, 0.0 }
 0x427   : > { %v768_v10 = vmax.f32 %v750_v3, 0.0  ;;  %v1159_v4 = vpop.f32.mrb[6].mxu1 }
 0x428   : > { %v765_v5 = vadd.f32 %v1159_v4, %v669_v0  ;;  %v759_v12 = vpop.f32.mrb[7].mxu1 }
 0x429   : > { %v1206_v13 = vpack.c.bf16 %v769_v9, %v768_v10  ;;  %v760_v14 = vadd.f32 %v759_v12, %v664_v11 }
 0x42a   : > { %v771_v15 = vmax.f32 %v765_v5, 0.0 }
 0x42b   : > { %v770_v16 = vmax.f32 %v760_v14, 0.0  ;;  %1207 = vmatprep.subr.bf16.mxu0 %v1206_v13  ;;  %1214 = vmatprep.subr.bf16.mxu1 %v1206_v13 }
 0x42c   : > { %1209 = vmatpush3.bf16.msra.mxu0 %v1206_v13  ;;  %1216 = vmatpush3.bf16.msra.mxu1 %v1206_v13 }
 0x42d   : > { %v1210_v17 = vpack.c.bf16 %v771_v15, %v770_v16 }
 0x42f   : > { %1211 = vmatprep.subr.bf16.mxu0 %v1210_v17  ;;  %1215 = vmatprep.subr.bf16.mxu1 %v1210_v17 }
 0x430   : > { %1213 = vmatpush3.bf16.msra.mxu0 %v1210_v17  ;;  %1217 = vmatpush3.bf16.msra.mxu1 %v1210_v17 }
 0x433   : > { %1169 = vmatmul.mubr.msk.f32.vlgmr.msra.gmra.mrb[8].mxu0 %vm277_vm0, %v1050_v18  ;;  %1172 = vmatmul.mubr.msk.f32.vlgmr.msra.gmra.mrb[8].mxu1 %vm277_vm0, %v1052_v19 }
 0x506   : > { %v1170_v26 = vpop.f32.mrb[8].mxu0  ;;  %v1173_v27 = vpop.f32.mrb[8].mxu1 }
 0x507   : > { %v886_v28 = vadd.f32 %v1170_v26, %v790_v20  ;;  %v880_v29 = vpop.f32.mrb[9].mxu0  ;;  %v890_v30 = vpop.f32.mrb[9].mxu1  ;;  %v896_v31 = vadd.f32 %v1173_v27, %v800_v22 }
 0x508   : > { %v881_v32 = vadd.f32 %v880_v29, %v785_v21  ;;  %v891_v33 = vadd.f32 %v890_v30, %v795_v23 }
 0x509   : > { %v900_v34 = vmax.f32 %v886_v28, 0.0  ;;  %v902_v38 = vmax.f32 %v896_v31, 0.0 }
 0x50a   : > { %v899_v35 = vmax.f32 %v881_v32, 0.0  ;;  %v901_v36 = vmax.f32 %v891_v33, 0.0 }
 0x50b   : > { %v920_v37 = vmul.f32 %v909_v24, %v900_v34  ;;  %v922_v45 = vmul.f32 %v917_v41, %v902_v38 }
 0x50c   : > { %v919_v39 = vmul.f32 %v905_v25, %v899_v35  ;;  %v921_v42 = vmul.f32 %v913_v40, %v901_v36 }
 0x50e   : > { %v923_v43 = vadd.f32 %v920_v37, %v919_v39 }
 0x510   : > { %v924_v44 = vadd.f32 %v923_v43, %v921_v42 }
 0x512   : > { %v925_v46 = vadd.f32 %v924_v44, %v922_v45 }
 0x514   : > { %v926_v47 = vrot.slane %v925_v46, 4 }
 0x516   : > { %v927_v48 = vadd.f32 %v926_v47, %v925_v46 }
 0x518   : > { %v928_v49 = vrot.slane %v927_v48, 2 }
 0x51a   : > { %v929_v50 = vadd.f32 %v928_v49, %v927_v48 }
 0x51c   : > { %v930_v51 = vrot.slane %v929_v50, 1 }
 0x51e   : > { %v931_v53 = vadd.f32 %v930_v51, %v929_v50 }
 0x520   : > { %v937_v54 = vadd.f32 %v935_v52, %v931_v53 }
 0x522   : > { %938 = vst [vmem:[%s185_s12] sm:$0x1] %v937_v54 }
 0x523   : > { %1285 = shalt.err (!%p1282_p3)
}
 0x524   : > { %s1286_s30 = scalar_lea.hbm %s1599_s22, 16  ;;  %s1290_s7 = scalar_lea.hbm %s1645_s4, 32 }
 0x525   : > { %p1287_p4 = scmp.ne.s32.totalorder %s1599_s22, %s1286_s30  ;;  %p1291_p9 = scmp.lt.u32.totalorder %s1599_s22, %s1645_s4 }
 0x526   : > { %p1292_p10 = scmp.lt.u32.totalorder %s1290_s7, %s1286_s30  ;;  %p1294_p12 = scmp.lt.u32.totalorder %s1286_s30, %s1599_s22 }
 0x527   : > { %p1288_p7 = pnand %p1287_p4, %p1404_p5 }
 0x528   : > { %p1293_p11 = por %p1292_p10, %p1291_p9 }
 0x529   : > { %p1289_p8 = pneg %p1288_p7 }
 0x52a   : > { %p1295_p13 = por %p1294_p12, %p1293_p11 }
 0x52c   : > { %p1296_p0 = pnand %p1295_p13, %p1289_p8 }
 0x52e   : > { %1299 = shalt.err (!%p1296_p0)
}
 0x52f   : > { %1218 = dma.vmem_to_hbm [thread:$0]  (%p1404_p5), %s1601_s13, 16, %s1599_s22, %s940_s23  }
 0x530 PF: > { %p1224_p1 = scmp.ge.s32.totalorder %s1334_s18, 2  ;;  %s964_s10 = sand.u32 1, %s1322_s15  }
 0x531   : > { %s965_s11 = scalar_lea.sflag [#allocation3], %s964_s10 }
 0x532   : > { %p1221_p2 = pnand %p1224_p1, %p1408_p6 }
 0x534   : > { %1317 = dma.done.wait (!%p1221_p2), %s965_s11, 16  }
 0x535   : > { %1319 = vsyncadd (!%p1221_p2), %s965_s11, 4294967280  ;;  %p14_p3 = scmp.ge.s32.totalorder %s1391_s21, 4   ;;  %s1648_s15 = smov %s1326_s16 }
 0x536   : > { %s1649_s16 = smov %s1330_s17  ;;  %s1650_s17 = smov %s1402_s24 }
 0x537   : > { %s1651_s18 = smov %s1391_s21  ;;  %16 = sbr.rel (!%p14_p3) target bundleno = 3 (0x3), region = 79 }
 0x53e   :  { %969 = vsyncpa [#allocation3], 1 }
 0x53f   :  { %971 = vsyncpa [#allocation3 + $0x1], 1 }

</bundles_post_ra>
